<compile_context>
chip_gen: v7x
topology: tpu7x:2x2x1
jax: 0.10.0
libtpu: 0.0.40
codegen_flags: <defaults>
</compile_context>

<pallas_src>
import functools

import jax
import jax.numpy as jnp
from jax.experimental import pallas as pl
from jax.experimental.pallas import tpu as pltpu


# ----------------------------------------------------------------------------
# Activation functions (static, traced into the kernel body).
# ----------------------------------------------------------------------------
def _sigmoid(x):
    return jax.nn.sigmoid(x)


def _tanh(x):
    return jnp.tanh(x)


def _relu(x):
    return jax.nn.relu(x)


# ----------------------------------------------------------------------------
# Static planning helpers (pure Python, run at trace time).
# ----------------------------------------------------------------------------
_TARGET_BLOCK_BYTES = 2 * 1024 * 1024  # ~2 MiB per input block; 4x with in+out double-buffering


def _sublane_rows(dtype):
    # Rows per packed sublane tile: 8 for 32-bit, 16 for 16-bit, 32 for 8-bit.
    return {4: 8, 2: 16, 1: 32}.get(jnp.dtype(dtype).itemsize, 8)


def _build_segments(group_sizes, sub, c_out):
    """Split the channel range [0, c_out) into sublane-aligned segments.

    Returns a tuple of segments, each either
      ("direct", start, end, act_idx)                      -- run of pure-group tiles
      ("masked", start, end, ((rel_start, act_idx), ...))  -- one boundary-straddling tile
    """
    starts, base = [], 0
    for g in group_sizes:
        starts.append(base)
        base += g
    ends = [s + g for s, g in zip(starts, group_sizes)]

    def groups_in(lo, hi):
        return tuple(i for i in range(len(group_sizes))
                     if starts[i] < hi and ends[i] > lo)

    n_tiles = pl.cdiv(c_out, sub)
    segments = []
    t = 0
    while t < n_tiles:
        lo, hi = t * sub, min((t + 1) * sub, c_out)
        gs = groups_in(lo, hi)
        if len(gs) == 1:
            g = gs[0]
            t2 = t + 1
            while t2 < n_tiles:
                lo2, hi2 = t2 * sub, min((t2 + 1) * sub, c_out)
                if groups_in(lo2, hi2) == (g,):
                    t2 += 1
                else:
                    break
            segments.append(("direct", lo, min(t2 * sub, c_out), g))
            t = t2
        else:
            pieces = tuple((max(starts[g], lo) - lo, g) for g in gs)
            segments.append(("masked", lo, hi, pieces))
            t += 1
    return tuple(segments)


def _pick_spatial_tile(hw, bytes_per_lane, target_bytes=_TARGET_BLOCK_BYTES):
    """Largest 128-multiple lane tile <= target bytes (capped at the padded row)."""
    full = pl.cdiv(hw, 128) * 128
    target_lanes = max(128, (target_bytes // bytes_per_lane) // 128 * 128)
    return int(min(full, target_lanes))


def _pick_batch_block(n, n_spatial, per_batch_bytes, target_bytes=_TARGET_BLOCK_BYTES):
    """Block over batch only when one spatial block covers the whole row; keep
    >= 2 total grid steps when possible (so both v7x TensorCores get work)."""
    if n_spatial > 1 or n <= 1:
        return 1
    bn = 1
    for cand in range(2, n + 1):
        if n % cand:
            continue
        if cand * per_batch_bytes > target_bytes:
            break
        if n // cand < 2:
            break
        bn = cand
    return bn


# ----------------------------------------------------------------------------
# Pallas kernel: per-segment activation with one lane/sublane-dense store each.
# ----------------------------------------------------------------------------
def _smoe_kernel(x_ref, o_ref, *, segments, activations):
    for kind, lo, hi, payload in segments:
        if kind == "direct":
            act = activations[payload]
            o_ref[:, lo:hi, :] = act(x_ref[:, lo:hi, :]).astype(o_ref.dtype)
        else:
            # Boundary-straddling sublane tile: evaluate only the activations
            # present in this tile and select by channel id; the channel-id
            # tensor is (1, seg, 1) and broadcast by jnp.where.
            xs = x_ref[:, lo:hi, :]
            cid = jax.lax.broadcasted_iota(jnp.int32, (1, hi - lo, 1), 1)
            out = activations[payload[0][1]](xs)
            for rel_start, g in payload[1:]:
                out = jnp.where(cid >= rel_start, activations[g](xs), out)
            o_ref[:, lo:hi, :] = out.astype(o_ref.dtype)


# ----------------------------------------------------------------------------
# Wrapper
# ----------------------------------------------------------------------------
def smoe_last_layer_activations(x, group_sizes, activations):
    """x: (N, C, H, W) array (NCHW). Returns (N, sum(group_sizes), H, W)."""
    group_sizes = tuple(int(g) for g in group_sizes)
    activations = tuple(activations)
    assert len(group_sizes) == len(activations)

    N, C, H, W = x.shape
    c_out = sum(group_sizes)
    assert c_out <= C, "group sizes exceed available channels"
    hw = H * W
    dtype = x.dtype
    itemsize = jnp.dtype(dtype).itemsize
    sub = _sublane_rows(dtype)

    # Trivial reshape (contiguous trailing dims) -> no HBM copy.
    x_flat = x.reshape(N, C, hw)
    if c_out < C and c_out % 8 != 0:
        # The channel block must be 8-divisible or equal the full channel dim.
        # Only in this (rare) case do we pay a wrapper-side slice; otherwise the
        # BlockSpec simply never DMAs the unused trailing channels.
        x_flat = x_flat[:, :c_out, :]

    bytes_per_lane = c_out * itemsize
    thw = _pick_spatial_tile(hw, bytes_per_lane)
    n_spatial = pl.cdiv(hw, thw)
    bn = _pick_batch_block(N, n_spatial, bytes_per_lane * thw)
    n_batch = N // bn

    segments = _build_segments(group_sizes, sub, c_out)
    kernel = functools.partial(_smoe_kernel, segments=segments,
                               activations=activations)

    out_flat = pl.pallas_call(
        kernel,
        out_shape=jax.ShapeDtypeStruct((N, c_out, hw), dtype),
        grid_spec=pltpu.PrefetchScalarGridSpec(
            num_scalar_prefetch=0,
            grid=(n_batch, n_spatial),
            in_specs=[pl.BlockSpec((bn, c_out, thw), lambda n, s: (n, 0, s))],
            out_specs=pl.BlockSpec((bn, c_out, thw), lambda n, s: (n, 0, s)),
        ),
        compiler_params=pltpu.CompilerParams(
            dimension_semantics=("parallel", "parallel"),
            vmem_limit_bytes=32 * 1024 * 1024,
        ),
    )(x_flat)

    return out_flat.reshape(N, c_out, H, W)


# ----------------------------------------------------------------------------
# Pure-JAX reference (mirrors the PyTorch forward exactly).
# ----------------------------------------------------------------------------
def smoe_reference(x, group_sizes, activations):
    out, base = [], 0
    for gs, act in zip(group_sizes, activations):
        out.append(act(x[:, base:base + gs]))
        base += gs
    return jnp.concatenate(out, axis=1)


if __name__ == "__main__":
    # Module configuration (the "__init__" arguments), chosen deterministically.
    group_sizes = (4, 4, 8)                       # sum = 16 channels
    activations = (_sigmoid, _tanh, _relu)        # boundary at ch 4 is unaligned -> hybrid path

    # Case 1: c_out == C, 128-aligned spatial extent.
    x = jax.random.normal(jax.random.PRNGKey(0), (2, 16, 16, 16), dtype=jnp.float32)
    out = jax.block_until_ready(smoe_last_layer_activations(x, group_sizes, activations))
    ref = smoe_reference(x, group_sizes, activations)
    assert out.shape == ref.shape == (2, 16, 16, 16)
    assert jnp.allclose(out, ref, atol=1e-6, rtol=1e-6), "mismatch vs reference (case 1)"

    # Case 2: c_out < C (unused trailing channels never DMA'd) and H*W not a
    # multiple of 128 (validates Mosaic's masked partial edge block).
    x2 = jax.random.normal(jax.random.PRNGKey(1), (2, 24, 10, 13), dtype=jnp.float32)
    out2 = jax.block_until_ready(smoe_last_layer_activations(x2, group_sizes, activations))
    ref2 = smoe_reference(x2, group_sizes, activations)
    assert out2.shape == ref2.shape == (2, 16, 10, 13)
    assert jnp.allclose(out2, ref2, atol=1e-6, rtol=1e-6), "mismatch vs reference (case 2)"

    print("KERNEL_OK")
</pallas_src>

<mosaic_0001>
module attributes {stable_mosaic.version = 11 : i64} {
  func.func @_smoe_kernel(%arg0: i32, %arg1: i32, %arg2: memref<1x16x256xf32, #tpu.memory_space<vmem>>, %arg3: memref<1x16x256xf32, #tpu.memory_space<vmem>>) attributes {dimension_semantics = [#tpu.dimension_semantics<parallel>, #tpu.dimension_semantics<parallel>], iteration_bounds = array<i64: 2, 1>, scalar_prefetch = 0 : i64, scratch_operands = 0 : i64, tpu.core_type = #tpu.core_type<tc>, window_params = [{transform_indices = @transform_0, window_bounds = array<i64: 1, 16, 256>}, {transform_indices = @transform_1, window_bounds = array<i64: 1, 16, 256>}]} {
    %c0 = arith.constant 0 : index
    %c0_0 = arith.constant 0 : index
    %c0_1 = arith.constant 0 : index
    %0 = vector.load %arg2[%c0, %c0_0, %c0_1] : memref<1x16x256xf32, #tpu.memory_space<vmem>>, vector<1x8x256xf32>
    %1 = tpu.iota {dimensions = array<i32: 1>} : vector<1x8x1xi32>
    %2 = arith.negf %0 : vector<1x8x256xf32>
    %3 = math.exp %2 : vector<1x8x256xf32>
    %cst = arith.constant 1.000000e+00 : f32
    %4 = vector.broadcast %cst : f32 to vector<1x8x256xf32>
    %5 = arith.addf %4, %3 : vector<1x8x256xf32>
    %6 = arith.divf %4, %5 : vector<1x8x256xf32>
    %c4_i32 = arith.constant 4 : i32
    %7 = vector.broadcast %c4_i32 : i32 to vector<1x8x1xi32>
    %8 = arith.cmpi sge, %1, %7 : vector<1x8x1xi32>
    %9 = math.tanh %0 : vector<1x8x256xf32>
    %10 = vector.shape_cast %8 : vector<1x8x1xi1> to vector<1x8x1xi1>
    %11 = vector.broadcast %10 : vector<1x8x1xi1> to vector<1x8x256xi1>
    %12 = arith.select %11, %9, %6 : vector<1x8x256xi1>, vector<1x8x256xf32>
    %c0_2 = arith.constant 0 : index
    %c0_3 = arith.constant 0 : index
    %c0_4 = arith.constant 0 : index
    %13 = vector.load %arg3[%c0_2, %c0_3, %c0_4] : memref<1x16x256xf32, #tpu.memory_space<vmem>>, vector<1x8x256xf32>
    tpu.vector_store %arg3[%c0_2, %c0_3, %c0_4], %12 {strides = array<i32>} : memref<1x16x256xf32, #tpu.memory_space<vmem>>, vector<1x8x256xf32>,
    %c0_5 = arith.constant 0 : index
    %c8 = arith.constant 8 : index
    %c0_6 = arith.constant 0 : index
    %14 = vector.load %arg2[%c0_5, %c8, %c0_6] : memref<1x16x256xf32, #tpu.memory_space<vmem>>, vector<1x8x256xf32>
    %cst_7 = arith.constant 0.000000e+00 : f32
    %15 = vector.broadcast %cst_7 : f32 to vector<1x8x256xf32>
    %16 = arith.maximumf %14, %15 : vector<1x8x256xf32>
    %c0_8 = arith.constant 0 : index
    %c8_9 = arith.constant 8 : index
    %c0_10 = arith.constant 0 : index
    %17 = vector.load %arg3[%c0_8, %c8_9, %c0_10] : memref<1x16x256xf32, #tpu.memory_space<vmem>>, vector<1x8x256xf32>
    tpu.vector_store %arg3[%c0_8, %c8_9, %c0_10], %16 {strides = array<i32>} : memref<1x16x256xf32, #tpu.memory_space<vmem>>, vector<1x8x256xf32>,
    return
  }
  func.func @transform_0(%arg0: i32, %arg1: i32) -> (i32, i32, i32) {
    %c0_i32 = arith.constant 0 : i32
    %c0_i32_0 = arith.constant 0 : i32
    return %arg0, %c0_i32, %arg1 : i32, i32, i32
  }
  func.func @transform_1(%arg0: i32, %arg1: i32) -> (i32, i32, i32) {
    %c0_i32 = arith.constant 0 : i32
    %c0_i32_0 = arith.constant 0 : i32
    return %arg0, %c0_i32, %arg1 : i32, i32, i32
  }
}

</mosaic_0001>

<bundles_post_ra>
// kernel: tpu_custom_call.1
= control target key start
LH: loop header
LB: loop body
LE: loop exit
PB: predicated region body
PF: predicated region fallthrough
CT: control target
= control target key end

     0   :  { %6 = vsyncpa [#allocation3], 0  ;;  %s691_s0 = inlined_call_operand.hbm [shape: f32[2,16,256], index: 0, kind: input, shape index: {}]   ;;  %s692_s1 = inlined_call_operand.hbm [shape: f32[2,16,256], index: 1, kind: output, shape index: {}]  }
   0x1   :  { %8 = vsyncpa [#allocation3 + $0x1], 0 }
   0x2   :  { %9 = vsyncpa [#allocation4], 0 }
   0x3   :  { %11 = vsyncpa [#allocation4 + $0x1], 0  ;;  %s516_s6 = smov 0   ;;  %s518_s7 = smov 0  }
   0x4   :  { %s520_s8 = smov 0   ;;  %s522_s9 = smov 0  }
   0x5   :  { %s524_s10 = smov 0   ;;  %s526_s11 = smov 0  }
   0x6 LB: > { %s289_s12 = sadd.s32 4294967295, %s498_s11   ;;  %s290_s13 = sadd.s32 4294967294, %s498_s11   ;;  %s498_s11 = sphi %s526_s11, %s17_s11   ;;  %s494_s10 = sphi %s524_s10, %s707_s10   ;;  %s490_s9 = sphi %s522_s9, %s706_s9   ;;  %s486_s8 = sphi %s520_s8, %s705_s8   ;;  %s482_s7 = sphi %s518_s7, %s704_s7   ;;  %s478_s6 = sphi %s516_s6, %s703_s6  }
   0x7   : > { %s29_s14 = sadd.s32 1, %s494_s10  ;;  %s38_s15 = sadd.s32 1, %s486_s8 }
   0x8   : > { %p31_p0 = scmp.ge.s32.totalorder %s29_s14, 2  ;;  %p45_p1 = scmp.ne.s32.totalorder %s486_s8, %s482_s7 }
   0x9   : > { %p46_p2 = scmp.eq.s32.totalorder %s498_s11, 0  ;;  %p51_p3 = scmp.ne.s32.totalorder %s482_s7, %s478_s6 }
   0xa   : > { %s709_s14 = smov (%p31_p0, %s29_s14), 0  ;;  %p52_p5 = scmp.eq.s32.totalorder %s289_s12, 0 }
   0xb   : > { %p557_p4 = por %p46_p2, %p45_p1  ;;  %s33_s17 = ssub.s32 %s494_s10, %s709_s14 }
   0xc   : > { %p77_p6 = scmp.eq.s32.totalorder %s289_s12, 1  ;;  %p36_p7 = scmp.eq.s32.totalorder %s33_s17, 0 }
   0xd   : > { %p563_p8 = por %p52_p5, %p51_p3  ;;  %p83_p10 = scmp.eq.s32.totalorder %s290_s13, 1 }
   0xe   : > { %p567_p9 = por %p77_p6, %p45_p1  ;;  %p320_p13 = scmp.lt.s32.totalorder %s498_s11, 2 }
   0xf   : > { %s572_s20 = scalar_select %p36_p7, %s486_s8, %s38_s15  }
  0x10   : > { %s696_s19 = scalar_select %p567_p9, 1, 0 }
  0x11   : > { %p574_p11 = por %p83_p10, %p51_p3  ;;  %s103_s22 = sand.u32 1, %s486_s8  }
  0x12   : > { %s293_s23 = sshll.u32 %s103_s22, 5  ;;  %s306_s24 = sshll.u32 %s494_s10, 9 }
  0x13   : > { %s697_s21 = scalar_select %p574_p11, 1, 0 }
  0x14   : > { %s585_s27 = scalar_lea.hbm %s691_s0, %s306_s24  ;;  %s107_s28 = scalar_lea.vmem [#allocation2], %s293_s23 }
  0x15   : > { %s116_s29 = sshll.u32 %s107_s28, 4  ;;  %p591_p0 = pnand %p320_p13, %p557_p4  ;;  %s587_s29 = int_to_ptr.vmem [resolvable:$true] %s116_s29 }
  0x16   : > { %s596_s2 = scalar_lea.sflag [#allocation3], %s103_s22  ;;  %s386_s3 = scalar_lea.hbm %s585_s27, 512 }
  0x17   : > { %p387_p2 = scmp.ne.s32.totalorder %s585_s27, %s386_s3  ;;  %p388_p3 = pneg %p591_p0 }
  0x18   : > { %s391_s12 = scalar_lea.hbm %s691_s0, 1024  ;;  %p392_p4 = scmp.lt.u32.totalorder %s585_s27, %s691_s0 }
  0x19   : > { %p389_p5 = pnand %p388_p3, %p387_p2  ;;  %p393_p7 = scmp.lt.u32.totalorder %s391_s12, %s386_s3 }
  0x1a   : > { %p395_p13 = scmp.lt.u32.totalorder %s386_s3, %s585_s27 }
  0x1b   : > { %p390_p6 = pneg %p389_p5  ;;  %p394_p10 = por %p393_p7, %p392_p4 }
  0x1d   : > { %p396_p12 = por %p395_p13, %p394_p10 }
  0x1f   : > { %p397_p1 = pnand %p396_p12, %p390_p6 }
  0x21   : > { %400 = shalt.err (!%p397_p1)
}
  0x22   : > { %s401_s16 = scalar_lea.vmem %s587_s29, 512  ;;  %s500_s17 = smov [#allocation2]  }
  0x23   : > { %p402_p2 = scmp.ne.s32.totalorder %s587_s29, %s401_s16  ;;  %s406_s22 = sshll.u32 %s500_s17, 4  ;;  %s407_s22 = int_to_ptr.vmem [resolvable:$false] %s406_s22 }
  0x24   : > { %s408_s23 = scalar_lea.vmem %s407_s22, 1024  ;;  %p409_p9 = scmp.lt.s32.totalorder %s587_s29, %s407_s22 }
  0x25   : > { %p404_p5 = pnand %p402_p2, %p388_p3  ;;  %p410_p4 = scmp.lt.s32.totalorder %s408_s23, %s401_s16 }
  0x27   : > { %p405_p11 = pneg %p404_p5  ;;  %p411_p7 = por %p410_p4, %p409_p9 }
  0x29   : > { %p412_p10 = pnand %p411_p7, %p405_p11 }
  0x2b   : > { %415 = shalt.err (!%p412_p10)
}
  0x2c   : > { %s501_s24 = smov 256   ;;  %s502_s25 = smov 16  }
  0x2d   : > { %315 = dma.hbm_to_vmem [thread:$0]  (!%p591_p0), %s585_s27, 512, %s587_s29, %s596_s2, %s501_s24, %s501_s24, %s502_s25  }
  0x2e   : > { %p124_p12 = scmp.lt.s32.totalorder %s498_s11, 3  ;;  %p699_p1 = scmp.ge.s32.totalorder %s498_s11, 1 }
  0x30   : > { %p125_p3 = pnand %p699_p1, %p124_p12 }
  0x31   : > { %s628_s26 = sand.u32 (!%p125_p3), 1, %s482_s7  }
  0x32   : > { %128 = sbr.rel (%p125_p3) target bundleno = 102 (0x66), region = 24  ;;  %s297_s28 = sshll.u32 (!%p125_p3), %s628_s26, 5 }
  0x33   : > { %s131_s3 = scalar_lea.sflag (!%p125_p3), [#allocation3], %s628_s26  ;;  %s134_s4 = scalar_lea.vmem (!%p125_p3), [#allocation2], %s297_s28 }
  0x39   : > { %469 = dma.done.wait (%p563_p8), %s131_s3, 512  }
  0x3a   : > { %471 = vsyncadd (%p563_p8), %s131_s3, 4294966784  ;;  %v155_v0 = vld [vmem:[%s134_s4] sm:$0xff]  ;;  %v156_v1 = vld [vmem:[%s134_s4 + $0x8] sm:$0xff]  ;;  %s152_s27 = scalar_lea.vmem [#allocation5], %s297_s28  ;;  %v157_v12 = vlaneseq  ;;  %s307_s29 = sshll.u32 %s490_s9, 9 }
  0x3b   : > { %v180_v2 = vld [vmem:[%s134_s4 + $0x10] sm:$0xff]  ;;  %v299_v3 = vmul.f32 -1.442695, %v155_v0  ;;  %v300_v4 = vmul.f32 -1.442695, %v156_v1  ;;  %v181_v6 = vld [vmem:[%s134_s4 + $0x18] sm:$0xff]  ;;  %s642_s5 = scalar_lea.hbm %s692_s1, %s307_s29 }
  0x3c   : > { %v182_v5 = vmax.f32 %v180_v2, 0.0  ;;  %v183_v7 = vmax.f32 %v181_v6, 0.0  ;;  %v158_v13 = vshrl.u32 %v157_v12, 7  ;;  %s202_s18 = sshll.u32 %s152_s27, 4  ;;  %s187_s9 = scalar_lea.sflag [#allocation4], %s628_s26  ;;  %s637_s18 = int_to_ptr.vmem [resolvable:$true] %s202_s18 }
  0x3d   : > { %374 = vpow2.f32 %v299_v3  ;;  %s416_s12 = scalar_lea.vmem %s637_s18, 512  ;;  %p700_p9 = scmp.ne.s32.totalorder %s696_s19, 0 }
  0x3e   : > { %184 = vst [vmem:[%s152_s27 + $0x10] sm:$0xff] %v182_v5  ;;  %376 = vpow2.f32 %v300_v4  ;;  %185 = vst [vmem:[%s152_s27 + $0x18] sm:$0xff] %v183_v7  ;;  %vm171_vm0 = vcmp.ge.s32.totalorder %v158_v13, 4  ;;  %p417_p8 = scmp.ne.s32.totalorder %s637_s18, %s416_s12  ;;  %s503_s13 = smov [#allocation5]  }
  0x3f   : > { %378 = vtanh.f32 %v155_v0  ;;  %s420_s15 = sshll.u32 %s503_s13, 4  ;;  %s421_s15 = int_to_ptr.vmem [resolvable:$false] %s420_s15 }
  0x40   : > { %380 = vtanh.f32 %v156_v1  ;;  %p418_p11 = pnand %p417_p8, %p700_p9  ;;  %s422_s16 = scalar_lea.vmem %s421_s15, 1024 }
  0x41   : > { %p423_p6 = scmp.lt.s32.totalorder %s637_s18, %s421_s15  ;;  %p424_p13 = scmp.lt.s32.totalorder %s422_s16, %s416_s12 }
  0x42   : > { %p419_p0 = pneg %p418_p11 }
  0x43   : > { %p425_p2 = por %p424_p13, %p423_p6 }
  0x45   : > { %p426_p5 = pnand %p425_p2, %p419_p0 }
  0x47   : > { %v375_v8 = vpop.eup %374 }
  0x48   : > { %v377_v9 = vpop.eup %376  ;;  %v165_v10 = vadd.f32 1.0, %v375_v8 }
  0x49   : > { %v166_v11 = vadd.f32 1.0, %v377_v9  ;;  %v379_v14 = vpop.eup %378 }
  0x4a   : > { %382 = vrcp.f32 %v165_v10  ;;  %v381_v15 = vpop.eup %380 }
  0x4b   : > { %384 = vrcp.f32 %v166_v11 }
  0x54   : > { %v383_v16 = vpop.eup %382 }
  0x55   : > { %v385_v17 = vpop.eup %384  ;;  %v176_v18 = vsel %vm171_vm0, %v379_v14, %v383_v16 }
  0x56   : > { %178 = vst [vmem:[%s152_s27] sm:$0xff] %v176_v18  ;;  %v177_v19 = vsel %vm171_vm0, %v381_v15, %v385_v17 }
  0x57   : > { %179 = vst [vmem:[%s152_s27 + $0x8] sm:$0xff] %v177_v19 }
  0x58   : > { %429 = shalt.err (!%p426_p5)
}
  0x59   : > { %s430_s17 = scalar_lea.hbm %s642_s5, 512  ;;  %s434_s24 = scalar_lea.hbm %s692_s1, 1024 }
  0x5a   : > { %p431_p4 = scmp.ne.s32.totalorder %s642_s5, %s430_s17  ;;  %p435_p12 = scmp.lt.u32.totalorder %s642_s5, %s692_s1 }
  0x5b   : > { %p436_p1 = scmp.lt.u32.totalorder %s434_s24, %s430_s17  ;;  %p438_p8 = scmp.lt.u32.totalorder %s430_s17, %s642_s5 }
  0x5c   : > { %p432_p7 = pnand %p431_p4, %p700_p9 }
  0x5d   : > { %p437_p3 = por %p436_p1, %p435_p12 }
  0x5e   : > { %p433_p10 = pneg %p432_p7 }
  0x5f   : > { %p439_p11 = por %p438_p8, %p437_p3 }
  0x61   : > { %p440_p0 = pnand %p439_p11, %p433_p10 }
  0x63   : > { %443 = shalt.err (!%p440_p0)
}
  0x64   : > { %s504_s3 = smov 256   ;;  %s505_s4 = smov 16  }
  0x65   : > { %310 = dma.vmem_to_hbm [thread:$0]  (%p700_p9), %s637_s18, 512, %s642_s5, %s187_s9, %s504_s3, %s504_s3, %s505_s4  }
  0x66 PF: > { %s217_s27 = sand.u32 1, %s478_s6   ;;  %p701_p6 = scmp.ne.s32.totalorder %s697_s21, 0 }
  0x67   : > { %p702_p13 = scmp.ge.s32.totalorder %s498_s11, 2  ;;  %s218_s29 = scalar_lea.sflag [#allocation4], %s217_s27 }
  0x69   : > { %p317_p2 = pnand %p702_p13, %p701_p6 }
  0x6b   : > { %473 = dma.done.wait (!%p317_p2), %s218_s29, 512  }
  0x6c   : > { %475 = vsyncadd (!%p317_p2), %s218_s29, 4294966784  ;;  %s17_s11 = sadd.s32 1, %s498_s11   ;;  %s703_s6 = smov %s482_s7 }
  0x6d   : > { %p14_p5 = scmp.ge.s32.totalorder %s17_s11, 4   ;;  %s704_s7 = smov %s486_s8 }
  0x6e   : > { %s705_s8 = smov %s572_s20  ;;  %s706_s9 = smov %s494_s10 }
  0x6f   : > { %s707_s10 = smov %s709_s14  ;;  %16 = sbr.rel (!%p14_p5) target bundleno = 6 (0x6), region = 69 }
  0x76   :  { %223 = vsyncpa [#allocation3], 1 }
  0x77   :  { %225 = vsyncpa [#allocation3 + $0x1], 1 }
  0x78   :  { %226 = vsyncpa [#allocation4], 1 }
  0x79   :  { %228 = vsyncpa [#allocation4 + $0x1], 1 }

</bundles_post_ra>
